<compile_context>
chip_gen: v5e
topology: v5e:2x2
jax: 0.10.0
libtpu: 0.0.40
codegen_flags: <defaults>
</compile_context>

<pallas_src>
import functools

import jax
import jax.numpy as jnp
from jax import lax
from jax.experimental import pallas as pl
from jax.experimental.pallas import tpu as pltpu

# ----------------------------- model hyper-params ---------------------------
VOCAB_SIZE = 50          # synthetic (PreProcessText not available)
PAD_IDX = 0
EMB_DIM = 50
N_FILTERS = 100
FILTER_SIZES = (3, 4, 5)
OUTPUT_DIM = 1

BATCH = 2
SEQ_LEN = 16

# ------------------------------ padded layouts ------------------------------
KMAX = max(FILTER_SIZES)                 # 5   (all filters zero-padded to this)
VP = 64                                  # vocab 50 -> 64 (sublane aligned)
NFP = 128                                # filters 100 -> 128 (lane dense)
NCOL = len(FILTER_SIZES) * NFP           # 384 = 3 * 128
KTOT = KMAX * VP                         # 320 = fused contraction length


# --------------------------------- kernel -----------------------------------
def cnn_text_kernel(ids_ref, w_ref, aux_ref, o_ref, *, batch, seq):
    """Single invocation processes the full batch (everything VMEM resident).

    ids_ref : (B*S, 1)     int32 token ids
    w_ref   : (KTOT, NCOL) bf16  fused (embedding-table (x) conv) weights
    aux_ref : (4, NCOL)    f32   row0=conv bias, row1=fc weight,
                                 row2=mask tail (fs-1), row3=fc bias (bcast)
    o_ref   : (B, 1)       f32   logits
    """
    bs = batch * seq

    # ---- one-hot token encoding on the VPU (only 128 B of ids DMA'd) -------
    ids = ids_ref[...]                                            # (bs, 1) i32
    lane = lax.broadcasted_iota(jnp.int32, (bs, VP), 1)
    onehot = (ids == lane).astype(jnp.float32)                    # (bs, VP)

    # ---- fused LHS: tap-k block = one-hot of the token at position r+k -----
    # (rolls are XLU ops; rows that wrap across the batch boundary only reach
    #  zero-weight taps or masked positions, see mask below).
    blocks = [onehot]
    for k in range(1, KMAX):
        blocks.append(pltpu.roll(onehot, bs - k, axis=0))
    lhs = jnp.concatenate(blocks, axis=1).astype(jnp.bfloat16)    # (bs, KTOT)

    # ---- all three convs + embedding lookup as ONE bf16 MXU matmul ---------
    acc = jnp.dot(lhs, w_ref[...],
                  preferred_element_type=jnp.float32)             # (bs, NCOL) f32

    # ---- bias + ReLU --------------------------------------------------------
    z = jnp.maximum(acc + aux_ref[0:1, :], 0.0)
    z = z.reshape(batch, seq, NCOL)                               # (B, S, NCOL)

    # ---- mask positions invalid for each filter width, then max-over-time ---
    # column c is valid at position t iff t <= seq - fs(c)  <=>  t < seq - tail
    tail = aux_ref[2:3, :].astype(jnp.int32).reshape(1, 1, NCOL)  # fs - 1
    t = lax.broadcasted_iota(jnp.int32, (batch, seq, NCOL), 1)
    z = jnp.where(t < (seq - tail), z, 0.0)                       # safe: post-ReLU >= 0
    pooled = jnp.max(z, axis=1)                                   # (B, NCOL)

    # ---- FC on VPU/XLU (lane multiply + cross-lane reduce), kept in f32 -----
    logits = jnp.sum(pooled * aux_ref[1:2, :], axis=1, keepdims=True)
    logits = logits + aux_ref[3:4, 0:1]

    # TODO(synk): dropout is identity (inference); training-mode masking omitted.
    # (B,1) store is a masked partial store -- negligible at 2 floats.
    o_ref[...] = logits.astype(o_ref.dtype)


# --------------------------------- wrapper ----------------------------------
@jax.jit
def cnn_text_forward(text, packed):
    """text: (B, S) int32 token ids.  Returns (B, 1) float32 logits."""
    B, S = text.shape
    ids = text.reshape(B * S, 1).astype(jnp.int32)

    kernel = functools.partial(cnn_text_kernel, batch=B, seq=S)

    # No grid: single step, whole (tiny) arrays pinned in VMEM -- avoids the
    # auto double-buffering / pipeline prologue of a one-step grid.
    return pl.pallas_call(
        kernel,
        out_shape=jax.ShapeDtypeStruct((B, OUTPUT_DIM), jnp.float32),
        in_specs=[
            pl.BlockSpec(memory_space=pltpu.MemorySpace.VMEM),   # token ids
            pl.BlockSpec(memory_space=pltpu.MemorySpace.VMEM),   # fused bf16 weights
            pl.BlockSpec(memory_space=pltpu.MemorySpace.VMEM),   # merged aux params
        ],
        out_specs=pl.BlockSpec(memory_space=pltpu.MemorySpace.VMEM),
    )(ids, packed["w"], packed["aux"])


# ----------------------- deterministic parameter init -----------------------
def init_params(key):
    keys = jax.random.split(key, 9)
    params = {}
    emb = 0.1 * jax.random.normal(keys[0], (VOCAB_SIZE, EMB_DIM), jnp.float32)
    emb = emb.at[PAD_IDX].set(0.0)                 # padding_idx row is zero
    params["embedding"] = emb
    for i, fs in enumerate(FILTER_SIZES):
        # stored as (fs, E, NF); PyTorch layout would be (NF, 1, fs, E)
        params[f"conv{fs}_w"] = 0.1 * jax.random.normal(
            keys[1 + i], (fs, EMB_DIM, N_FILTERS), jnp.float32)
        params[f"conv{fs}_b"] = 0.1 * jax.random.normal(
            keys[4 + i], (1, N_FILTERS), jnp.float32)
    params["fc_w"] = 0.1 * jax.random.normal(
        keys[7], (len(FILTER_SIZES) * N_FILTERS, OUTPUT_DIM), jnp.float32)
    params["fc_b"] = 0.1 * jax.random.normal(
        keys[8], (1, OUTPUT_DIM), jnp.float32)
    return params


def pack_params(params):
    """Pack logical params into the fused, lane-dense, bf16 inference layout.

    The (frozen) embedding table is folded into the conv weights:
        W'[k*VP + v, g*NFP + n] = sum_e tab[v, e] * conv_w_fs[k, e, n]
    so the kernel's one-hot feeds the conv matmul directly.
    """
    tab = jnp.zeros((VP, EMB_DIM), jnp.float32)
    tab = tab.at[:VOCAB_SIZE, :].set(params["embedding"])

    w = jnp.zeros((KTOT, NCOL), jnp.float32)
    aux = jnp.zeros((4, NCOL), jnp.float32)
    for g, fs in enumerate(FILTER_SIZES):
        cw = params[f"conv{fs}_w"]                                 # (fs, E, NF)
        folded = jnp.einsum("ve,ken->kvn", tab, cw)                # (fs, VP, NF)
        for k in range(fs):
            w = w.at[k * VP:(k + 1) * VP,
                     g * NFP:g * NFP + N_FILTERS].set(folded[k])
        aux = aux.at[0, g * NFP:g * NFP + N_FILTERS].set(params[f"conv{fs}_b"][0])
        aux = aux.at[1, g * NFP:g * NFP + N_FILTERS].set(
            params["fc_w"][g * N_FILTERS:(g + 1) * N_FILTERS, 0])
        aux = aux.at[2, g * NFP:(g + 1) * NFP].set(float(fs - 1))  # mask tail
    aux = aux.at[3, :].set(params["fc_b"][0, 0])

    # bf16 for the dominant HBM transfer; f32 accumulation in-kernel.
    return {"w": w.astype(jnp.bfloat16), "aux": aux}


# ------------------------------ pure-JAX reference --------------------------
def reference_forward(text, params):
    """Mirrors the PyTorch forward exactly (NCHW conv, eval-mode dropout)."""
    embedded = jnp.take(params["embedding"], text, axis=0)       # (B, S, E)
    x = embedded[:, None, :, :]                                  # (B, 1, S, E)
    pooled = []
    for fs in FILTER_SIZES:
        # (fs, E, NF) -> OIHW (NF, 1, fs, E)
        w = jnp.transpose(params[f"conv{fs}_w"], (2, 0, 1))[:, None, :, :]
        conv = lax.conv_general_dilated(
            x, w, window_strides=(1, 1), padding="VALID",
            dimension_numbers=("NCHW", "OIHW", "NCHW"))          # (B, NF, L, 1)
        conv = conv + params[f"conv{fs}_b"].reshape(1, N_FILTERS, 1, 1)
        conv = jax.nn.relu(conv)[..., 0]                         # (B, NF, L)
        pooled.append(jnp.max(conv, axis=-1))                    # (B, NF)
    cat = jnp.concatenate(pooled, axis=1)                        # (B, 3*NF)
    return cat @ params["fc_w"] + params["fc_b"]                 # (B, 1)


# ----------------------------------- main ------------------------------------
if __name__ == "__main__":
    key = jax.random.PRNGKey(0)
    pkey, tkey = jax.random.split(key)
    params = init_params(pkey)
    packed = pack_params(params)
    text = jax.random.randint(tkey, (BATCH, SEQ_LEN), 0, VOCAB_SIZE, jnp.int32)

    out = jax.block_until_ready(cnn_text_forward(text, packed))
    ref = jax.block_until_ready(reference_forward(text, params))

    assert out.shape == (BATCH, OUTPUT_DIM), out.shape
    # bf16 weights (f32 accumulation) -> loosened tolerance vs. the f32 reference.
    assert jnp.allclose(out, ref, atol=2e-2, rtol=2e-2), (out, ref)

    print("KERNEL_OK")
</pallas_src>

<mosaic_0001>
module attributes {stable_mosaic.version = 11 : i64} {
  func.func @cnn_text_kernel(%arg0: memref<32x1xi32, #tpu.memory_space<vmem>>, %arg1: memref<320x384xbf16, #tpu.memory_space<vmem>>, %arg2: memref<4x384xf32, #tpu.memory_space<vmem>>, %arg3: memref<2x1xf32, #tpu.memory_space<vmem>>) attributes {dimension_semantics = [], scalar_prefetch = 0 : i64, scratch_operands = 0 : i64, tpu.core_type = #tpu.core_type<tc>} {
    %c0 = arith.constant 0 : index
    %c0_0 = arith.constant 0 : index
    %0 = vector.load %arg0[%c0, %c0_0] : memref<32x1xi32, #tpu.memory_space<vmem>>, vector<32x1xi32>
    %1 = tpu.iota {dimensions = array<i32: 1>} : vector<32x64xi32>
    %2 = vector.broadcast %0 : vector<32x1xi32> to vector<32x64xi32>
    %3 = arith.cmpi eq, %2, %1 : vector<32x64xi32>
    %4 = arith.extui %3 : vector<32x64xi1> to vector<32x64xi32>
    %5 = arith.sitofp %4 : vector<32x64xi32> to vector<32x64xf32>
    %c31_i32 = arith.constant 31 : i32
    %6 = tpu.dynamic_rotate %5 by %c31_i32 dim 0 : vector<32x64xf32>, i32 -> vector<32x64xf32>
    %c30_i32 = arith.constant 30 : i32
    %7 = tpu.dynamic_rotate %5 by %c30_i32 dim 0 : vector<32x64xf32>, i32 -> vector<32x64xf32>
    %c29_i32 = arith.constant 29 : i32
    %8 = tpu.dynamic_rotate %5 by %c29_i32 dim 0 : vector<32x64xf32>, i32 -> vector<32x64xf32>
    %c28_i32 = arith.constant 28 : i32
    %9 = tpu.dynamic_rotate %5 by %c28_i32 dim 0 : vector<32x64xf32>, i32 -> vector<32x64xf32>
    %10 = tpu.concatenate %5, %6, %7, %8, %9 in 1 : vector<32x64xf32>, vector<32x64xf32>, vector<32x64xf32>, vector<32x64xf32>, vector<32x64xf32> -> vector<32x320xf32>
    %11 = arith.truncf %10 : vector<32x320xf32> to vector<32x320xbf16>
    %c0_1 = arith.constant 0 : index
    %c0_2 = arith.constant 0 : index
    %12 = vector.load %arg1[%c0_1, %c0_2] : memref<320x384xbf16, #tpu.memory_space<vmem>>, vector<320x384xbf16>
    %cst = arith.constant dense<0.000000e+00> : vector<32x384xf32>
    %13 = tpu.matmul %11, %12, %cst {dimension_numbers = #tpu.dot_dimension_numbers<[1], [0], [0], [1], [0, 0, 1, 1], [], []>} : vector<32x320xbf16>, vector<320x384xbf16>, vector<32x384xf32> -> vector<32x384xf32>
    %c0_3 = arith.constant 0 : index
    %c0_4 = arith.constant 0 : index
    %14 = vector.load %arg2[%c0_3, %c0_4] : memref<4x384xf32, #tpu.memory_space<vmem>>, vector<1x384xf32>
    %15 = vector.broadcast %14 : vector<1x384xf32> to vector<32x384xf32>
    %16 = arith.addf %13, %15 : vector<32x384xf32>
    %cst_5 = arith.constant 0.000000e+00 : f32
    %17 = vector.broadcast %cst_5 : f32 to vector<32x384xf32>
    %18 = arith.maximumf %16, %17 : vector<32x384xf32>
    %19 = vector.shape_cast %18 : vector<32x384xf32> to vector<2x16x384xf32>
    %c2 = arith.constant 2 : index
    %c0_6 = arith.constant 0 : index
    %20 = vector.load %arg2[%c2, %c0_6] : memref<4x384xf32, #tpu.memory_space<vmem>>, vector<1x384xf32>
    %21 = arith.fptosi %20 : vector<1x384xf32> to vector<1x384xi32>
    %22 = vector.shape_cast %21 : vector<1x384xi32> to vector<1x1x384xi32>
    %23 = tpu.iota {dimensions = array<i32: 1>} : vector<2x16x384xi32>
    %c16_i32 = arith.constant 16 : i32
    %24 = vector.broadcast %c16_i32 : i32 to vector<1x1x384xi32>
    %25 = arith.subi %24, %22 : vector<1x1x384xi32>
    %26 = vector.broadcast %25 : vector<1x1x384xi32> to vector<2x16x384xi32>
    %27 = arith.cmpi slt, %23, %26 : vector<2x16x384xi32>
    %cst_7 = arith.constant 0.000000e+00 : f32
    %28 = vector.broadcast %cst_7 : f32 to vector<2x16x384xf32>
    %29 = arith.select %27, %19, %28 : vector<2x16x384xi1>, vector<2x16x384xf32>
    %cst_8 = arith.constant dense<0xFF800000> : vector<2x384xf32>
    %30 = vector.multi_reduction <maximumf>, %29, %cst_8 [1] : vector<2x16x384xf32> to vector<2x384xf32>
    %c1 = arith.constant 1 : index
    %c0_9 = arith.constant 0 : index
    %31 = vector.load %arg2[%c1, %c0_9] : memref<4x384xf32, #tpu.memory_space<vmem>>, vector<1x384xf32>
    %32 = vector.broadcast %31 : vector<1x384xf32> to vector<2x384xf32>
    %33 = arith.mulf %30, %32 : vector<2x384xf32>
    %cst_10 = arith.constant dense<0.000000e+00> : vector<2xf32>
    %34 = vector.multi_reduction <add>, %33, %cst_10 [1] : vector<2x384xf32> to vector<2xf32>
    %35 = vector.shape_cast %34 : vector<2xf32> to vector<2x1xf32>
    %c3 = arith.constant 3 : index
    %c0_11 = arith.constant 0 : index
    %36 = vector.load %arg2[%c3, %c0_11] : memref<4x384xf32, #tpu.memory_space<vmem>>, vector<1x1xf32>
    %37 = vector.broadcast %36 : vector<1x1xf32> to vector<2x1xf32>
    %38 = arith.addf %35, %37 : vector<2x1xf32>
    %c0_12 = arith.constant 0 : index
    %c0_13 = arith.constant 0 : index
    %39 = vector.load %arg3[%c0_12, %c0_13] : memref<2x1xf32, #tpu.memory_space<vmem>>, vector<2x1xf32>
    tpu.vector_store %arg3[%c0_12, %c0_13], %38 {strides = array<i32>} : memref<2x1xf32, #tpu.memory_space<vmem>>, vector<2x1xf32>,
    return
  }
}

</mosaic_0001>

<bundles_post_ra>
// kernel: cnn_text_forward.1
= control target key start
LH: loop header
LB: loop body
LE: loop exit
PB: predicated region body
PF: predicated region fallthrough
CT: control target
= control target key end

     0   :  { %8 = vsyncpa [#allocation3], 0  ;;  %s1232_s15 = smov [#allocation2]   ;;  %s1233_s17 = smov 192   ;;  %s1454_s0 = inlined_call_operand.vmem [shape: s32[32,1], index: 0, kind: input, shape index: {}]   ;;  %s1455_s1 = inlined_call_operand.hbm [shape: bf16[320,384], index: 1, kind: input, shape index: {}]   ;;  %s1456_s2 = inlined_call_operand.vmem [shape: f32[4,384], index: 2, kind: input, shape index: {}]   ;;  %s1457_s3 = inlined_call_operand.vmem [shape: f32[2,1], index: 3, kind: output, shape index: {}]  }
   0x1   :  { %s15_s14 = sshll.u32 %s1455_s1, 4  ;;  %s17_s16 = sshll.u32 %s1232_s15, 4  ;;  %s16_s14 = int_to_ptr.hbm [resolvable:$true] %s15_s14  ;;  %s18_s16 = int_to_ptr.vmem [resolvable:$true] %s17_s16 }
   0x2   :  { %s1234_s18 = smov 12  }
   0x3   :  { %23 = dma.hbm_to_vmem [thread:$0]  %s16_s14, 7680, %s18_s16, [#allocation3], %s1233_s17, %s1233_s17, %s1234_s18  }
   0x4   :  { %1230 = dma.done.wait [#allocation3], 7680  }
   0x5   :  { %1231 = vsyncadd [#allocation3], 4294959616  ;;  %v1235_v0 = vmov 0   ;;  %v33_v1 = vld [vmem:[%s1454_s0 + $0x10] sm:$0xff]  ;;  %v31_v2 = vld [vmem:[%s1454_s0] sm:$0xff]  ;;  %v35_v17 = vlaneseq  ;;  %v1236_v28 = vmov 0.0  }
   0x6   :  { %1184 = vset.pattern.permute.xlu1 %v1235_v0  ;;  %1183 = vset.pattern.permute.xlu0 %v1235_v0  ;;  %v34_v3 = vld [vmem:[%s1454_s0 + $0x18] sm:$0xff]  ;;  %v32_v4 = vld [vmem:[%s1454_s0 + $0x8] sm:$0xff]  ;;  %v1170_v6 = vld [vmem:[#allocation2 + $0x1d0] sm:$0xf0]  ;;  %vm131_vm5 = vcmask 523264   ;;  %s1237_s0 = smov 64  }
   0x7   :  { %44 = vperm.xlu1 %1184, %v33_v1   ;;  %38 = vperm.xlu0 %1183, %v31_v2   ;;  %v1094_v5 = vld [vmem:[#allocation2 + $0x1c8] sm:$0xf]  ;;  %v1082_v8 = vld [vmem:[#allocation2 + $0x1b0] sm:$0xf]  ;;  %v1167_v9 = vld [vmem:[#allocation2 + $0x1b8] sm:$0xf0] }
   0x8   :  { %v1095_v7 = vor.u32 %v1170_v6, %v1094_v5  ;;  %v1083_v10 = vor.u32 %v1167_v9, %v1082_v8  ;;  %v1070_v11 = vld [vmem:[#allocation2 + $0x198] sm:$0xf]  ;;  %v1164_v12 = vld [vmem:[#allocation2 + $0x1a0] sm:$0xf0]  ;;  %v1058_v14 = vld [vmem:[#allocation2 + $0x180] sm:$0xf] }
   0x9   :  { %v1071_v13 = vor.u32 %v1164_v12, %v1070_v11  ;;  %v1161_v15 = vld [vmem:[#allocation2 + $0x188] sm:$0xf0]  ;;  %v36_v18 = vand.u32 127, %v35_v17  ;;  %v1273_v19 = vshrl.u32 %v35_v17, 7  ;;  %v950_v22 = vld [vmem:[#allocation2 + $0xa8] sm:$0xf] }
   0xa   :  { %602 = vmatpush.bf16.msra.mxu2 %v1095_v7  ;;  %v1059_v16 = vor.u32 %v1161_v15, %v1058_v14  ;;  %v1134_v23 = vld [vmem:[#allocation2 + $0xb0] sm:$0xf0]  ;;  %v1133_v25 = vld [vmem:[#allocation2 + $0xac] sm:$0xf]  ;;  %v952_v26 = vld [vmem:[#allocation2 + $0xb4] sm:$0xf0] }
   0xb   :  { %v951_v24 = vor.u32 %v1134_v23, %v950_v22  ;;  %v938_v27 = vld [vmem:[#allocation2 + $0x90] sm:$0xf]  ;;  %v1131_v30 = vld [vmem:[#allocation2 + $0x98] sm:$0xf0]  ;;  %vm85_vm2 = vcmp.lt.s32.totalorder %v1273_v19, 5  ;;  %vm67_vm3 = vcmp.lt.s32.totalorder %v1273_v19, 7  ;;  %v955_v33 = vor.u32 %v1133_v25, %v952_v26 }
   0xc   :  { %vm94_vm4 = vcmp.lt.s32.totalorder %v1273_v19, 4  ;;  %v1130_v32 = vld [vmem:[#allocation2 + $0x94] sm:$0xf]  ;;  %v939_v34 = vor.u32 %v1131_v30, %v938_v27  ;;  %v940_v35 = vld [vmem:[#allocation2 + $0x9c] sm:$0xf0]  ;;  %vm76_vm8 = vcmp.lt.s32.totalorder %v1273_v19, 6 }
   0xd   :  { %560 = vmatpush.bf16.msra.mxu0 %v951_v24  ;;  %v926_v36 = vld [vmem:[#allocation2 + $0x78] sm:$0xf]  ;;  %v1128_v37 = vld [vmem:[#allocation2 + $0x80] sm:$0xf0]  ;;  %v1046_v40 = vld [vmem:[#allocation2 + $0x168] sm:$0xf]  ;;  %617 = vmatpush.bf16.msra.mxu3 %v955_v33  ;;  %v943_v44 = vor.u32 %v1130_v32, %v940_v35 }
   0xe   :  { %603 = vmatpush.bf16.msra.mxu2 %v1083_v10  ;;  %v1158_v41 = vld [vmem:[#allocation2 + $0x170] sm:$0xf0]  ;;  %v1157_v46 = vld [vmem:[#allocation2 + $0x16c] sm:$0xf]  ;;  %v1048_v47 = vld [vmem:[#allocation2 + $0x174] sm:$0xf0]  ;;  %v927_v50 = vor.u32 %v1128_v37, %v926_v36 }
   0xf   :  { %47 = vperm.xlu1 %1184, %v34_v3   ;;  %41 = vperm.xlu0 %1183, %v32_v4   ;;  %v1047_v45 = vor.u32 %v1158_v41, %v1046_v40  ;;  %v1127_v51 = vld [vmem:[#allocation2 + $0x7c] sm:$0xf]  ;;  %v928_v52 = vld [vmem:[#allocation2 + $0x84] sm:$0xf0]  ;;  %v1051_v53 = vor.u32 %v1157_v46, %v1048_v47  ;;  %v1034_v54 = vld [vmem:[#allocation2 + $0x150] sm:$0xf] }
  0x10   :  { %v914_v55 = vld [vmem:[#allocation2 + $0x60] sm:$0xf]  ;;  %v1125_v56 = vld [vmem:[#allocation2 + $0x68] sm:$0xf0]  ;;  %v1155_v57 = vld [vmem:[#allocation2 + $0x158] sm:$0xf0]  ;;  %v931_v1 = vor.u32 %v1127_v51, %v928_v52 }
  0x11   :  { %561 = vmatpush.bf16.msra.mxu0 %v939_v34  ;;  %579 = vmatpush.bf16.msra.mxu1 %v1047_v45  ;;  %v1035_v61 = vor.u32 %v1155_v57, %v1034_v54  ;;  %v915_v4 = vor.u32 %v1125_v56, %v914_v55  ;;  %v1124_v5 = vld [vmem:[#allocation2 + $0x64] sm:$0xf]  ;;  %v916_v6 = vld [vmem:[#allocation2 + $0x6c] sm:$0xf0]  ;;  %v1154_v11 = vld [vmem:[#allocation2 + $0x154] sm:$0xf] }
  0x12   :  { %604 = vmatpush.bf16.msra.mxu2 %v1071_v13  ;;  %618 = vmatpush.bf16.msra.mxu3 %v943_v44  ;;  %v902_v17 = vld [vmem:[#allocation2 + $0x48] sm:$0xf]  ;;  %v919_v23 = vor.u32 %v1124_v5, %v916_v6  ;;  %v1022_v24 = vld [vmem:[#allocation2 + $0x138] sm:$0xf]  ;;  %v1152_v25 = vld [vmem:[#allocation2 + $0x140] sm:$0xf0] }
  0x13   :  { %v1121_v26 = vld [vmem:[#allocation2 + $0x4c] sm:$0xf]  ;;  %v1151_v30 = vld [vmem:[#allocation2 + $0x13c] sm:$0xf]  ;;  %v1024_v32 = vld [vmem:[#allocation2 + $0x144] sm:$0xf0] }
  0x14   :  { %v1010_v35 = vld [vmem:[#allocation2 + $0x120] sm:$0xf]  ;;  %v1149_v36 = vld [vmem:[#allocation2 + $0x128] sm:$0xf0]  ;;  %v890_v40 = vld [vmem:[#allocation2 + $0x30] sm:$0xf]  ;;  %v1027_v44 = vor.u32 %v1151_v30, %v1024_v32 }
  0x15   :  { %562 = vmatpush.bf16.msra.mxu0 %v927_v50  ;;  %580 = vmatpush.bf16.msra.mxu1 %v1035_v61  ;;  %v1119_v41 = vld [vmem:[#allocation2 + $0x38] sm:$0xf0]  ;;  %v1118_v45 = vld [vmem:[#allocation2 + $0x34] sm:$0xf]  ;;  %v1011_v46 = vor.u32 %v1149_v36, %v1010_v35  ;;  %v892_v47 = vld [vmem:[#allocation2 + $0x3c] sm:$0xf0] }
  0x16   :  { %605 = vmatpush.bf16.msra.mxu2 %v1059_v16  ;;  %v1036_v16 = vld [vmem:[#allocation2 + $0x15c] sm:$0xf0]  ;;  %619 = vmatpush.bf16.msra.mxu3 %v931_v1  ;;  %v891_v52 = vor.u32 %v1119_v41, %v890_v40  ;;  %v1146_v54 = vld [vmem:[#allocation2 + $0x110] sm:$0xf0]  ;;  %v878_v55 = vld [vmem:[#allocation2 + $0x18] sm:$0xf]  ;;  %v895_v61 = vor.u32 %v1118_v45, %v892_v47 }
  0x17   :  { %v1039_v34 = vor.u32 %v1154_v11, %v1036_v16  ;;  %v1116_v56 = vld [vmem:[#allocation2 + $0x20] sm:$0xf0]  ;;  %v1113_v11 = vld [vmem:[#allocation2 + $0x8] sm:$0xf0]  ;;  %v1054_v36 = vld [vmem:[#allocation2 + $0x170] sm:$0xf] }
  0x18   :  { %v1137_v30 = vld [vmem:[#allocation2 + $0xc8] sm:$0xf0]  ;;  %v1136_v32 = vld [vmem:[#allocation2 + $0xc4] sm:$0xf]  ;;  %v1135_v41 = vld [vmem:[#allocation2 + $0xb8] sm:$0xf0] }
  0x19   :  { %563 = vmatpush.bf16.msra.mxu0 %v915_v4  ;;  %v1000_v4 = vld [vmem:[#allocation2 + $0x114] sm:$0xf0] }
  0x1a   :  { %636 = vmatpush.bf16.msrb.mxu2 %v1051_v53  ;;  %620 = vmatpush.bf16.msra.mxu3 %v919_v23  ;;  %v998_v53 = vld [vmem:[#allocation2 + $0x108] sm:$0xf]  ;;  %v1140_v23 = vld [vmem:[#allocation2 + $0xe0] sm:$0xf0]  ;;  %v1042_v47 = vld [vmem:[#allocation2 + $0x158] sm:$0xf] }
  0x1e   :  { %637 = vmatpush.bf16.msrb.mxu2 %v1039_v34  ;;  %v964_v34 = vld [vmem:[#allocation2 + $0xcc] sm:$0xf0] }
  0x1f   :  { %v967_v35 = vor.u32 %v1136_v32, %v964_v34  ;;  %v1163_v32 = vld [vmem:[#allocation2 + $0x19c] sm:$0xf] }
  0x22   :  { %638 = vmatpush.bf16.msrb.mxu2 %v1027_v44  ;;  %v1171_v44 = vld [vmem:[#allocation2 + $0x1d8] sm:$0xf0] }
  0x79   :  { %v45_v20 = vpop.permute.xlu1 %44  ;;  %v39_v21 = vpop.permute.xlu0 %38 }
  0x7a   :  { %vm51_vm0 = vcmp.eq.s32.totalorder %v45_v20, %v36_v18  ;;  %vm49_vm1 = vcmp.eq.s32.totalorder %v39_v21, %v36_v18 }
  0x7b   :  { %v1275_v29 = vsel %vm51_vm0, 1.0, %v1236_v28  ;;  %v1277_v31 = vsel %vm49_vm1, 1.0, %v1236_v28  ;;  %vm833_vm0 = vcmask 1041409   ;;  %vm842_vm1 = vcmask 1041408  }
  0x7c   :  { %v63_v38 = vrot.slane %v1275_v29, 1  ;;  %v83_v39 = vrot.slane %v1275_v29, 3  ;;  %v92_v42 = vrot.slane %v1275_v29, 4  ;;  %v61_v43 = vrot.slane %v1277_v31, 1 }
  0x7d   :  { %v81_v58 = vrot.slane %v1277_v31, 3  ;;  %v90_v62 = vrot.slane %v1277_v31, 4 }
  0x81   :  { %v48_v48 = vpop.permute.xlu1 %47  ;;  %v42_v49 = vpop.permute.xlu0 %41 }
  0x82   :  { %vm52_vm6 = vcmp.eq.s32.totalorder %v48_v48, %v36_v18  ;;  %vm50_vm7 = vcmp.eq.s32.totalorder %v42_v49, %v36_v18  ;;  %v1122_v18 = vld [vmem:[#allocation2 + $0x50] sm:$0xf0]  ;;  %v1148_v48 = vld [vmem:[#allocation2 + $0x124] sm:$0xf]  ;;  %v1012_v49 = vld [vmem:[#allocation2 + $0x12c] sm:$0xf0] }
  0x83   :  { %v1287_v59 = vsel %vm52_vm6, 1.0, %v1236_v28  ;;  %v1289_v60 = vsel %vm50_vm7, 1.0, %v1236_v28  ;;  %v904_v28 = vld [vmem:[#allocation2 + $0x54] sm:$0xf0]  ;;  %v903_v37 = vor.u32 %v1122_v18, %v902_v17  ;;  %v1142_v18 = vld [vmem:[#allocation2 + $0xf4] sm:$0xf] }
  0x84   :  { %v64_v63 = vrot.slane %v1287_v59, 1  ;;  %v84_v0 = vrot.slane %v1287_v59, 3  ;;  %v91_v2 = vrot.slane %v1289_v60, 4  ;;  %v62_v3 = vrot.slane %v1289_v60, 1 }
  0x85   :  { %v82_v33 = vrot.slane %v1289_v60, 3  ;;  %564 = vmatpush.bf16.msra.mxu0 %v903_v37  ;;  %v93_v57 = vrot.slane %v1287_v59, 4  ;;  %v1159_v37 = vld [vmem:[#allocation2 + $0x178] sm:$0xf0] }
  0x86   :  { %v86_v7 = vsel %vm85_vm2, %v83_v39, %v84_v0  ;;  %v89_v8 = vsel %vm85_vm2, %v84_v0, %v81_v58  ;;  %v68_v9 = vsel %vm67_vm3, %v63_v38, %v64_v63  ;;  %v71_v10 = vsel %vm67_vm3, %v64_v63, %v61_v43  ;;  %v1115_v0 = vld [vmem:[#allocation2 + $0x1c] sm:$0xf] }
  0x87   :  { %v1200_v12 = vpack.i.bf16 %v89_v8, %v86_v7  ;;  %v1195_v13 = vpack.i.bf16 %v71_v10, %v68_v9  ;;  %v96_v14 = vsel %vm94_vm4, %v91_v2, %v92_v42  ;;  %v97_v15 = vsel %vm94_vm4, %v90_v62, %v91_v2  ;;  %v880_v2 = vld [vmem:[#allocation2 + $0x24] sm:$0xf0]  ;;  %v866_v10 = vld [vmem:[#allocation2] sm:$0xf] }
  0x88   :  { %v1316_v20 = vpack.c.bf16 %v96_v14, %v97_v15  ;;  %v69_v21 = vsel %vm67_vm3, %v62_v3, %v63_v38  ;;  %v70_v22 = vsel %vm67_vm3, %v61_v43, %v62_v3  ;;  %v1023_v38 = vor.u32 %v1152_v25, %v1022_v24  ;;  %v1145_v3 = vld [vmem:[#allocation2 + $0x10c] sm:$0xf]  ;;  %v1143_v14 = vld [vmem:[#allocation2 + $0xf8] sm:$0xf0]  ;;  %v868_v15 = vld [vmem:[#allocation2 + $0xc] sm:$0xf0] }
  0x89   :  { %1201 = vrot.lane.b32.xlu1 %v1200_v12, %s1237_s0  ;;  %1196 = vrot.lane.b32.xlu0 %v1195_v13, %s1237_s0  ;;  %v1185_v27 = vpack.i.bf16 %v69_v21, %v70_v22  ;;  %v907_v43 = vor.u32 %v1121_v26, %v904_v28  ;;  %v87_v50 = vsel %vm85_vm2, %v82_v33, %v83_v39  ;;  %v986_v12 = vld [vmem:[#allocation2 + $0xf0] sm:$0xf]  ;;  %v974_v22 = vld [vmem:[#allocation2 + $0xd8] sm:$0xf]  ;;  %v1139_v24 = vld [vmem:[#allocation2 + $0xdc] sm:$0xf] }
  0x8a   :  { %1104 = vmatmul.msk.bf16.vlgmr.msra.gmra.mxu2 %vm131_vm5, %v1316_v20  ;;  %581 = vmatpush.bf16.msra.mxu1 %v1023_v38  ;;  %v88_v51 = vsel %vm85_vm2, %v81_v58, %v82_v33  ;;  %v1015_v63 = vor.u32 %v1148_v48, %v1012_v49  ;;  %v999_v39 = vor.u32 %v1146_v54, %v998_v53  ;;  %v976_v26 = vld [vmem:[#allocation2 + $0xe4] sm:$0xf0]  ;;  %v962_v28 = vld [vmem:[#allocation2 + $0xc0] sm:$0xf]  ;;  %v958_v38 = vld [vmem:[#allocation2 + $0xb0] sm:$0xf] }
  0x8b   :  { %1186 = vrot.lane.b32.xlu2 %v1185_v27, %s1237_s0  ;;  %621 = vmatpush.bf16.msra.mxu3 %v907_v43  ;;  %v1190_v1 = vpack.i.bf16 %v87_v50, %v88_v51  ;;  %v879_v58 = vor.u32 %v1116_v56, %v878_v55  ;;  %v883_v5 = vor.u32 %v1115_v0, %v880_v2  ;;  %v1102_v43 = vld [vmem:[#allocation2 + $0x1d0] sm:$0xf]  ;;  %v1156_v48 = vld [vmem:[#allocation2 + $0x160] sm:$0xf0]  ;;  %v946_v49 = vld [vmem:[#allocation2 + $0x98] sm:$0xf] }
  0x8c   :  { %565 = vmatpush.bf16.msra.mxu0 %v891_v52  ;;  %639 = vmatpush.bf16.msrb.mxu2 %v1015_v63  ;;  %v1003_v6 = vor.u32 %v1145_v3, %v1000_v4  ;;  %v95_v7 = vsel %vm94_vm4, %v92_v42, %v93_v57  ;;  %v98_v8 = vsel %vm94_vm4, %v93_v57, %v90_v62  ;;  %v1112_v42 = vld [vmem:[#allocation2 + $0x4] sm:$0xf]  ;;  %v988_v62 = vld [vmem:[#allocation2 + $0xfc] sm:$0xf0]  ;;  %v1169_v52 = vld [vmem:[#allocation2 + $0x1cc] sm:$0xf] }
  0x8d   :  { %v1346_v9 = vpack.c.bf16 %v98_v8, %v95_v7  ;;  %v867_v13 = vor.u32 %v1113_v11, %v866_v10  ;;  %v987_v16 = vor.u32 %v1143_v14, %v986_v12  ;;  %v871_v17 = vor.u32 %v1112_v42, %v868_v15  ;;  %v1132_v51 = vld [vmem:[#allocation2 + $0xa0] sm:$0xf0]  ;;  %v1096_v53 = vld [vmem:[#allocation2 + $0x1d4] sm:$0xf0]  ;;  %v1030_v56 = vld [vmem:[#allocation2 + $0x140] sm:$0xf] }
  0x8e   :  { %582 = vmatpush.bf16.msra.mxu1 %v1011_v46  ;;  %v991_v21 = vor.u32 %v1142_v18, %v988_v62  ;;  %v975_v25 = vor.u32 %v1140_v23, %v974_v22  ;;  %v979_v27 = vor.u32 %v1139_v24, %v976_v26  ;;  %v963_v33 = vor.u32 %v1137_v30, %v962_v28  ;;  %v1153_v57 = vld [vmem:[#allocation2 + $0x148] sm:$0xf0]  ;;  %v1168_v2 = vld [vmem:[#allocation2 + $0x1c0] sm:$0xf0]  ;;  %v1018_v3 = vld [vmem:[#allocation2 + $0x128] sm:$0xf] }
  0x8f   :  { %622 = vmatpush.bf16.msra.mxu3 %v895_v61  ;;  %v1055_v40 = vor.u32 %v1159_v37, %v1054_v36  ;;  %v959_v45 = vor.u32 %v1135_v41, %v958_v38  ;;  %v1103_v46 = vor.u32 %v1171_v44, %v1102_v43  ;;  %v1043_v50 = vor.u32 %v1156_v48, %v1042_v47  ;;  %v934_v61 = vld [vmem:[#allocation2 + $0x80] sm:$0xf]  ;;  %v1129_v63 = vld [vmem:[#allocation2 + $0x88] sm:$0xf0]  ;;  %v1166_v8 = vld [vmem:[#allocation2 + $0x1b4] sm:$0xf] }
  0x90   :  { %566 = vmatpush.bf16.msra.mxu0 %v879_v58  ;;  %640 = vmatpush.bf16.msrb.mxu2 %v1003_v6  ;;  %v947_v54 = vor.u32 %v1132_v51, %v946_v49  ;;  %v1099_v55 = vor.u32 %v1169_v52, %v1096_v53  ;;  %v1031_v0 = vor.u32 %v1153_v57, %v1030_v56  ;;  %v1150_v58 = vld [vmem:[#allocation2 + $0x130] sm:$0xf0]  ;;  %v1084_v10 = vld [vmem:[#allocation2 + $0x1bc] sm:$0xf0]  ;;  %v1147_v14 = vld [vmem:[#allocation2 + $0x118] sm:$0xf0] }
  0x91   :  { %v1126_v6 = vld [vmem:[#allocation2 + $0x70] sm:$0xf0]  ;;  %v1019_v7 = vor.u32 %v1150_v58, %v1018_v3  ;;  %v1087_v12 = vor.u32 %v1166_v8, %v1084_v10  ;;  %v910_v42 = vld [vmem:[#allocation2 + $0x50] sm:$0xf]  ;;  %v1165_v18 = vld [vmem:[#allocation2 + $0x1a8] sm:$0xf0] }
  0x92   :  { %583 = vmatpush.bf16.msra.mxu1 %v999_v39  ;;  %v1090_v39 = vld [vmem:[#allocation2 + $0x1b8] sm:$0xf]  ;;  %v1144_v24 = vld [vmem:[#allocation2 + $0x100] sm:$0xf0]  ;;  %v1141_v36 = vld [vmem:[#allocation2 + $0xe8] sm:$0xf0] }
  0x93   :  { %1191 = vrot.lane.b32.xlu2 %v1190_v1, %s1237_s0  ;;  %623 = vmatpush.bf16.msra.mxu3 %v883_v5  ;;  %v935_v1 = vor.u32 %v1129_v63, %v934_v61  ;;  %v1091_v4 = vor.u32 %v1168_v2, %v1090_v39  ;;  %v922_v5 = vld [vmem:[#allocation2 + $0x68] sm:$0xf]  ;;  %v994_v23 = vld [vmem:[#allocation2 + $0xf8] sm:$0xf]  ;;  %v1120_v30 = vld [vmem:[#allocation2 + $0x40] sm:$0xf0] }
  0x94   :  { %567 = vmatpush.bf16.msra.mxu0 %v867_v13  ;;  %641 = vmatpush.bf16.msrb.mxu2 %v991_v21  ;;  %v923_v11 = vor.u32 %v1126_v6, %v922_v5  ;;  %v1006_v13 = vld [vmem:[#allocation2 + $0x110] sm:$0xf]  ;;  %v995_v28 = vor.u32 %v1144_v24, %v994_v23  ;;  %v1066_v41 = vld [vmem:[#allocation2 + $0x188] sm:$0xf]  ;;  %v1162_v43 = vld [vmem:[#allocation2 + $0x190] sm:$0xf0] }
  0x95   :  { %v1007_v15 = vor.u32 %v1147_v14, %v1006_v13  ;;  %v1067_v47 = vor.u32 %v1162_v43, %v1066_v41  ;;  %v73_v49 = vrot.slane %v1289_v60, 2  ;;  %v72_v51 = vrot.slane %v1277_v31, 2  ;;  %v1160_v56 = vld [vmem:[#allocation2 + $0x184] sm:$0xf] }
  0x96   :  { %584 = vmatpush.bf16.msra.mxu1 %v987_v16  ;;  %v1123_v16 = vld [vmem:[#allocation2 + $0x58] sm:$0xf0]  ;;  %v75_v6 = vrot.slane %v1287_v59, 2  ;;  %vm853_vm2 = vcmask 1024  }
  0x97   :  { %624 = vmatpush.bf16.msra.mxu3 %v871_v17  ;;  %v1078_v17 = vld [vmem:[#allocation2 + $0x1a0] sm:$0xf]  ;;  %v911_v21 = vor.u32 %v1123_v16, %v910_v42 }
  0x98   :  { %642 = vmatpush.bf16.msrb.mxu2 %v979_v27  ;;  %659 = vmatpush.bf16.msrb.mxu0 %v1099_v55  ;;  %v1079_v22 = vor.u32 %v1165_v18, %v1078_v17  ;;  %v1138_v55 = vld [vmem:[#allocation2 + $0xd0] sm:$0xf0]  ;;  %v80_v42 = vsel %vm76_vm8, %v75_v6, %v72_v51 }
  0x9a   :  { %1105 = vmatmul.msk.bf16.gmra.mxu2 %vm131_vm5, %v1346_v9  ;;  %585 = vmatpush.bf16.msra.mxu1 %v975_v25  ;;  %v898_v25 = vld [vmem:[#allocation2 + $0x38] sm:$0xf] }
  0x9b   :  { %693 = vmatpush.bf16.msrb.mxu3 %v1055_v40  ;;  %v899_v40 = vor.u32 %v1120_v30, %v898_v25 }
  0x9c   :  { %643 = vmatpush.bf16.msrb.mxu2 %v967_v35  ;;  %660 = vmatpush.bf16.msrb.mxu0 %v1087_v12  ;;  %v982_v35 = vld [vmem:[#allocation2 + $0xe0] sm:$0xf] }
  0x9d   :  { %v983_v48 = vor.u32 %v1141_v36, %v982_v35  ;;  %v226_v36 = vld [vmem:[%s1456_s2] ss:$4 sm:$0x7] }
  0x9e   :  { %586 = vmatpush.bf16.msra.mxu1 %v963_v33  ;;  %v1072_v33 = vld [vmem:[#allocation2 + $0x1a4] sm:$0xf0]  ;;  %v228_v41 = vperm.slane %v226_v36, 0 }
  0x9f   :  { %694 = vmatpush.bf16.msrb.mxu3 %v1043_v50  ;;  %v1075_v34 = vor.u32 %v1163_v32, %v1072_v33  ;;  %v74_v50 = vrot.slane %v1275_v29, 2 }
  0xa0   :  { %716 = vmatpush.bf16.msra.mxu2 %v1103_v46  ;;  %v1117_v46 = vld [vmem:[#allocation2 + $0x28] sm:$0xf0] }
  0xa1   :  { %661 = vmatpush.bf16.msrb.mxu0 %v1075_v34  ;;  %v78_v39 = vsel %vm76_vm8, %v73_v49, %v74_v50  ;;  %v77_v14 = vsel %vm76_vm8, %v74_v50, %v75_v6 }
  0xa2   :  { %674 = vmatpush.bf16.msrb.mxu1 %v959_v45  ;;  %v886_v45 = vld [vmem:[#allocation2 + $0x20] sm:$0xf] }
  0xa3   :  { %695 = vmatpush.bf16.msrb.mxu3 %v1031_v0  ;;  %v887_v52 = vor.u32 %v1117_v46, %v886_v45  ;;  %v874_v0 = vld [vmem:[#allocation2 + $0x8] sm:$0xf] }
  0xa4   :  { %717 = vmatpush.bf16.msra.mxu2 %v1091_v4 }
  0xa6   :  { %675 = vmatpush.bf16.msrb.mxu1 %v947_v54  ;;  %v970_v54 = vld [vmem:[#allocation2 + $0xc8] sm:$0xf] }
  0xa7   :  { %696 = vmatpush.bf16.msrb.mxu3 %v1019_v7  ;;  %v971_v63 = vor.u32 %v1138_v55, %v970_v54  ;;  %v229_v55 = vperm.slane %v226_v36, 1 }
  0xa8   :  { %718 = vmatpush.bf16.msra.mxu2 %v1079_v22 }
  0xaa   :  { %676 = vmatpush.bf16.msrb.mxu1 %v935_v1  ;;  %v1114_v1 = vld [vmem:[#allocation2 + $0x10] sm:$0xf0] }
  0xab   :  { %697 = vmatpush.bf16.msrb.mxu3 %v1007_v15  ;;  %v875_v58 = vor.u32 %v1114_v1, %v874_v0 }
  0xac   :  { %719 = vmatpush.bf16.msra.mxu2 %v1067_v47 }
  0xae   :  { %677 = vmatpush.bf16.msrb.mxu1 %v923_v11 }
  0xaf   :  { %698 = vmatpush.bf16.msrb.mxu3 %v995_v28 }
  0xb2   :  { %678 = vmatpush.bf16.msrb.mxu1 %v911_v21 }
  0xb3   :  { %699 = vmatpush.bf16.msrb.mxu3 %v983_v48 }
  0xb6   :  { %679 = vmatpush.bf16.msrb.mxu1 %v899_v40 }
  0xb7   :  { %700 = vmatpush.bf16.msrb.mxu3 %v971_v63 }
  0xba   :  { %680 = vmatpush.bf16.msrb.mxu1 %v887_v52 }
  0xbe   :  { %681 = vmatpush.bf16.msrb.mxu1 %v875_v58 }
  0xe5   :  { %v1187_v62 = vpop.permute.xlu2 %1186 }
  0xe6   :  { %v1189_v26 = vunpack.i.h.bf16 %v1187_v62  ;;  %v1188_v27 = vunpack.i.l.bf16 %v1187_v62 }
  0xe8   :  { %v132_v37 = vsel %vm131_vm5, %v1277_v31, %v1188_v27  ;;  %v133_v38 = vsel %vm131_vm5, %v1289_v60, %v1189_v26  ;;  %v1060_v60 = vld [vmem:[#allocation2 + $0x18c] sm:$0xf0]  ;;  %v79_v31 = vsel %vm76_vm8, %v72_v51, %v73_v49 }
  0xe9   :  { %v140_v44 = vpack.c.bf16 %v133_v38, %v132_v37  ;;  %v1063_v2 = vor.u32 %v1160_v56, %v1060_v60 }
  0xeb   :  { %568 = vmatmul.bf16.vlgmr.msra.gmra.mxu0 %v140_v44  ;;  %625 = vmatmul.bf16.vlgmr.msra.gmra.mxu3 %v140_v44 }
  0xec   :  { %662 = vmatpush.bf16.msrb.mxu0 %v1063_v2 }
  0xed   :  { %v1192_v53 = vpop.permute.xlu2 %1191 }
  0xee   :  { %v1194_v57 = vunpack.i.h.bf16 %v1192_v53  ;;  %v1193_v61 = vunpack.i.l.bf16 %v1192_v53 }
  0xf0   :  { %v136_v3 = vsel %vm131_vm5, %v79_v31, %v1193_v61  ;;  %v137_v4 = vsel %vm131_vm5, %v78_v39, %v1194_v57 }
  0xf1   :  { %v141_v5 = vpack.c.bf16 %v137_v4, %v136_v3  ;;  %v1393_v4 = vperm.slane %v226_v36, 2 }
  0xf3   :  { %587 = vmatmul.bf16.vlgmr.msra.gmra.mxu1 %v141_v5  ;;  %644 = vmatmul.bf16.vlgmr.msrb.gmra.mxu2 %v141_v5 }
  0xfb   :  { %v1202_v7 = vpop.permute.xlu1 %1201  ;;  %v1197_v8 = vpop.permute.xlu0 %1196 }
  0xfc   :  { %v1204_v10 = vunpack.i.h.bf16 %v1202_v7  ;;  %v1203_v11 = vunpack.i.l.bf16 %v1202_v7  ;;  %v1199_v12 = vunpack.i.h.bf16 %v1197_v8  ;;  %v1198_v13 = vunpack.i.l.bf16 %v1197_v8 }
  0xfe   :  { %v134_v15 = vsel %vm131_vm5, %v1275_v29, %v1198_v13  ;;  %v135_v16 = vsel %vm131_vm5, %v1287_v59, %v1199_v12  ;;  %v138_v17 = vsel %vm131_vm5, %v77_v14, %v1203_v11  ;;  %v139_v18 = vsel %vm131_vm5, %v80_v42, %v1204_v10 }
  0xff   :  { %v143_v62 = vpack.c.bf16 %v135_v16, %v134_v15  ;;  %v144_v21 = vpack.c.bf16 %v139_v18, %v138_v17 }
 0x101   :  { %573 = vmatmul.bf16.gmra.mxu0 %v143_v62  ;;  %630 = vmatmul.bf16.gmra.mxu3 %v143_v62 }
 0x103   :  { %592 = vmatmul.bf16.gmra.mxu1 %v144_v21  ;;  %649 = vmatmul.bf16.gmra.mxu2 %v144_v21 }
 0x10d   :  { %v607_v29 = vpop.f32.mrf.mxu2 }
 0x111   :  { %1106 = vmatmul.msk.bf16.vlgmr.msrb.gmra.mxu0 %vm131_vm5, %v1316_v20  ;;  %701 = vmatmul.bf16.vlgmr.msrb.gmra.mxu3 %v141_v5  ;;  %v746_v5 = vadd.s32 8, %v1273_v19 }
 0x113   :  { %682 = vmatmul.bf16.vlgmr.msrb.gmra.mxu1 %v140_v44  ;;  %1108 = vmatmul.msk.bf16.vlgmr.msra.gmra.mxu2 %vm131_vm5, %v1316_v20 }
 0x115   :  { %v609_v59 = vpop.f32.mrf.mxu2 }
 0x11d   :  { %v612_v22 = vpop.f32.mrf.mxu2 }
 0x121   :  { %1107 = vmatmul.msk.bf16.gmra.mxu0 %vm131_vm5, %v1346_v9  ;;  %706 = vmatmul.bf16.gmra.mxu3 %v144_v21 }
 0x123   :  { %687 = vmatmul.bf16.gmra.mxu1 %v143_v62  ;;  %1109 = vmatmul.msk.bf16.gmra.mxu2 %vm131_vm5, %v1346_v9  ;;  %v1110_v9 = vld [vmem:[%s1456_s2 + $0x2] ss:$4 sm:$0x7] }
 0x124   :  { %v1173_v43 = vceil.f32 %v1110_v9  ;;  %v1174_v44 = vfloor.f32 %v1110_v9  ;;  %vm1172_vm9 = vcmp.lt.s32.totalorder %v1110_v9, 0 }
 0x125   :  { %v614_v24 = vpop.f32.mrf.mxu2 }
 0x126   :  { %v1175_v47 = vsel %vm1172_vm9, %v1173_v43, %v1174_v44 }
 0x127   :  { %v1176_v53 = vcvt.f32.s32 %v1175_v47 }
 0x129   :  { %v747_v1 = vsub.s32 16, %v1176_v53 }
 0x12b   :  { %v748_v13 = vperm.slane %v747_v1, 0  ;;  %v749_v62 = vperm.slane %v747_v1, 1 }
 0x12d   :  { %vm1397_vm10 = vcmp.lt.s32.totalorder %v746_v5, %v748_v13  ;;  %vm751_vm11 = vcmp.lt.s32.totalorder %v1273_v19, %v748_v13  ;;  %vm1405_vm12 = vcmp.lt.s32.totalorder %v746_v5, %v749_v62  ;;  %vm1410_vm13 = vcmp.lt.s32.totalorder %v1273_v19, %v749_v62 }
 0x168   :  { %v569_v23 = vpop.f32.mrf.mxu0 }
 0x169   :  { %v570_v57 = vadd.f32 %v569_v23, %v228_v41 }
 0x16e   :  { %v626_v26 = vpop.f32.mrf.mxu3 }
 0x16f   :  { %v627_v31 = vadd.f32 %v626_v26, %v229_v55 }
 0x170   :  { %v588_v25 = vpop.f32.mrf.mxu1  ;;  %v571_v27 = vpop.f32.mrf.mxu0 }
 0x171   :  { %v572_v52 = vadd.f32 %v571_v27, %v228_v41  ;;  %v589_v0 = vadd.f32 %v588_v25, %v570_v57 }
 0x173   :  { %v608_v12 = vadd.f32 %v607_v29, %v589_v0 }
 0x175   :  { %v731_v29 = vmax.f32 %v608_v12, 0.0 }
 0x176   :  { %v645_v28 = vpop.f32.mrf.mxu2  ;;  %v628_v32 = vpop.f32.mrf.mxu3 }
 0x177   :  { %v629_v63 = vadd.f32 %v628_v32, %v229_v55  ;;  %v646_v8 = vadd.f32 %v645_v28, %v627_v31 }
 0x178   :  { %v590_v30 = vpop.f32.mrf.mxu1 }
 0x179   :  { %v591_v61 = vadd.f32 %v590_v30, %v572_v52 }
 0x17b   :  { %v610_v58 = vadd.f32 %v609_v59, %v591_v61 }
 0x17d   :  { %v734_v17 = vmax.f32 %v610_v58, 0.0 }
 0x17e   :  { %v647_v20 = vpop.f32.mrf.mxu2  ;;  %v574_v33 = vpop.f32.mrf.mxu0 }
 0x17f   :  { %v575_v48 = vadd.f32 %v574_v33, %v228_v41  ;;  %v648_v2 = vadd.f32 %v647_v20, %v629_v63  ;;  %v760_v36 = vsel %vm1397_vm10, %v734_v17, 0.0 }
 0x180   :  { %v593_v34 = vpop.f32.mrf.mxu1 }
 0x181   :  { %v594_v56 = vadd.f32 %v593_v34, %v575_v48 }
 0x183   :  { %v613_v3 = vadd.f32 %v612_v22, %v594_v56 }
 0x184   :  { %v631_v35 = vpop.f32.mrf.mxu3 }
 0x185   :  { %v737_v42 = vmax.f32 %v613_v3, 0.0  ;;  %v632_v27 = vadd.f32 %v631_v35, %v229_v55  ;;  %v750_v35 = vperm.slane %v747_v1, 2 }
 0x186   :  { %v1389_v37 = vpop.f32.mrf.mxu2  ;;  %v576_v38 = vpop.f32.mrf.mxu0 }
 0x187   :  { %v577_v45 = vadd.f32 %v576_v38, %v228_v41  ;;  %v763_v26 = vsel %vm751_vm11, %v737_v42, 0.0  ;;  %v757_v41 = vsel %vm751_vm11, %v731_v29, 0.0  ;;  %v651_v44 = vadd.f32 %v1389_v37, %v632_v27 }
 0x188   :  { %v595_v40 = vpop.f32.mrf.mxu1  ;;  %vm1421_vm14 = vcmp.lt.s32.totalorder %v746_v5, %v750_v35  ;;  %vm1426_vm15 = vcmp.lt.s32.totalorder %v1273_v19, %v750_v35 }
 0x189   :  { %v596_v51 = vadd.f32 %v595_v40, %v577_v45 }
 0x18b   :  { %v615_v60 = vadd.f32 %v614_v24, %v596_v51 }
 0x18c   :  { %v633_v46 = vpop.f32.mrf.mxu3 }
 0x18d   :  { %v740_v10 = vmax.f32 %v615_v60, 0.0  ;;  %v634_v45 = vadd.f32 %v633_v46, %v229_v55 }
 0x18e   :  { %v1391_v49 = vpop.f32.mrf.mxu2  ;;  %v664_v50 = vpop.f32.mrf.mxu0 }
 0x18f   :  { %v665_v15 = vadd.f32 %v664_v50, %v646_v8  ;;  %v766_v21 = vsel %vm1397_vm10, %v740_v10, 0.0  ;;  %v769_v50 = vmax.f32 %v757_v41, %v760_v36  ;;  %v653_v46 = vadd.f32 %v1391_v49, %v634_v45  ;;  %v1111_v36 = vld [vmem:[%s1456_s2 + $0x1] ss:$4 sm:$0x7] }
 0x190   :  { %v683_v54 = vpop.f32.mrf.mxu1  ;;  %v790_v32 = vmax.f32 %v763_v26, %v766_v21 }
 0x191   :  { %v684_v16 = vadd.f32 %v683_v54, %v1393_v4  ;;  %v732_v28 = vmax.f32 %v665_v15, 0.0  ;;  %v770_v63 = vrot.slane %v769_v50, 4 }
 0x192   :  { %v791_v51 = vrot.slane %v790_v32, 4 }
 0x193   :  { %v758_v47 = vsel %vm1410_vm13, %v732_v28, 0.0  ;;  %v771_v49 = vmax.f32 %v769_v50, %v770_v63 }
 0x194   :  { %v702_v39 = vpop.f32.mrf.mxu3  ;;  %v792_v60 = vmax.f32 %v790_v32, %v791_v51 }
 0x195   :  { %v703_v59 = vadd.f32 %v702_v39, %v684_v16 }
 0x196   :  { %v721_v6 = vpop.f32.mrf.mxu2  ;;  %v666_v7 = vpop.f32.mrf.mxu0 }
 0x197   :  { %v667_v11 = vadd.f32 %v666_v7, %v648_v2  ;;  %v722_v9 = vadd.f32 %v721_v6, %v703_v59  ;;  %v793_v7 = vrot.slane %v792_v60, 2  ;;  %v772_v59 = vrot.slane %v771_v49, 2 }
 0x198   :  { %v685_v14 = vpop.f32.mrf.mxu1 }
 0x199   :  { %v735_v22 = vmax.f32 %v667_v11, 0.0  ;;  %v686_v23 = vadd.f32 %v685_v14, %v1393_v4  ;;  %v733_v54 = vmax.f32 %v722_v9, 0.0  ;;  %v794_v17 = vmax.f32 %v792_v60, %v793_v7 }
 0x19b   :  { %v761_v38 = vsel %vm1405_vm12, %v735_v22, 0.0  ;;  %v759_v31 = vsel %vm1426_vm15, %v733_v54, 0.0  ;;  %v795_v27 = vrot.slane %v794_v17, 1 }
 0x19c   :  { %v704_v25 = vpop.f32.mrf.mxu3  ;;  %v776_v52 = vmax.f32 %v758_v47, %v761_v38 }
 0x19d   :  { %v705_v30 = vadd.f32 %v704_v25, %v686_v23  ;;  %v796_v9 = vmax.f32 %v794_v17, %v795_v27 }
 0x19e   :  { %v723_v33 = vpop.f32.mrf.mxu2  ;;  %v669_v34 = vpop.f32.mrf.mxu0  ;;  %v777_v0 = vrot.slane %v776_v52, 4 }
 0x19f   :  { %v724_v40 = vadd.f32 %v723_v33, %v705_v30  ;;  %v670_v56 = vadd.f32 %v669_v34, %v651_v44  ;;  %v773_v30 = vmax.f32 %v771_v49, %v772_v59 }
 0x1a0   :  { %v688_v43 = vpop.f32.mrf.mxu1  ;;  %v778_v8 = vmax.f32 %v776_v52, %v777_v0 }
 0x1a1   :  { %v736_v48 = vmax.f32 %v724_v40, 0.0  ;;  %v689_v61 = vadd.f32 %v688_v43, %v1393_v4  ;;  %v738_v19 = vmax.f32 %v670_v56, 0.0  ;;  %v774_v35 = vrot.slane %v773_v30, 1 }
 0x1a2   :  { %v779_v18 = vrot.slane %v778_v8, 2  ;;  %v814_v43 = vperm.slane %v1111_v36, 0 }
 0x1a3   :  { %v762_v55 = vsel %vm1421_vm14, %v736_v48, 0.0  ;;  %v764_v10 = vsel %vm1410_vm13, %v738_v19, 0.0  ;;  %v815_v48 = vperm.slane %v1111_v36, 1  ;;  %v775_v54 = vmax.f32 %v773_v30, %v774_v35 }
 0x1a4   :  { %v707_v37 = vpop.f32.mrf.mxu3  ;;  %v783_v58 = vmax.f32 %v759_v31, %v762_v55  ;;  %v780_v28 = vmax.f32 %v778_v8, %v779_v18  ;;  %v823_v52 = vmul.f32 %v814_v43, %v796_v9 }
 0x1a5   :  { %v708_v2 = vadd.f32 %v707_v37, %v689_v61  ;;  %v820_v63 = vmul.f32 %v814_v43, %v775_v54 }
 0x1a6   :  { %v726_v1 = vpop.f32.mrf.mxu2  ;;  %v671_v39 = vpop.f32.mrf.mxu0  ;;  %v784_v14 = vrot.slane %v783_v58, 4  ;;  %v781_v38 = vrot.slane %v780_v28, 1  ;;  %v832_v61 = vrot.slane %v823_v52, 7 }
 0x1a7   :  { %v672_v3 = vadd.f32 %v671_v39, %v653_v46  ;;  %v727_v11 = vadd.f32 %v726_v1, %v708_v2  ;;  %v816_v1 = vperm.slane %v1111_v36, 2 }
 0x1a8   :  { %v690_v5 = vpop.f32.mrf.mxu1  ;;  %v785_v29 = vmax.f32 %v783_v58, %v784_v14  ;;  %v782_v50 = vmax.f32 %v780_v28, %v781_v38  ;;  %v834_v19 = vsel %vm833_vm0, %v832_v61, %v820_v63 }
 0x1a9   :  { %v741_v6 = vmax.f32 %v672_v3, 0.0  ;;  %v691_v13 = vadd.f32 %v690_v5, %v1393_v4  ;;  %v739_v22 = vmax.f32 %v727_v11, 0.0  ;;  %v843_v5 = vsel %vm842_vm1, %v834_v19, 0.0 }
 0x1aa   :  { %v786_v20 = vrot.slane %v785_v29, 2  ;;  %v821_v55 = vmul.f32 %v815_v48, %v782_v50 }
 0x1ab   :  { %v767_v12 = vsel %vm1405_vm12, %v741_v6, 0.0  ;;  %v765_v4 = vsel %vm1426_vm15, %v739_v22, 0.0 }
 0x1ac   :  { %v797_v42 = vmax.f32 %v764_v10, %v767_v12  ;;  %v709_v15 = vpop.f32.mrf.mxu3  ;;  %v787_v44 = vmax.f32 %v785_v29, %v786_v20  ;;  %v1205_v10 = vld [vmem:[%s1456_s2 + $0x3] ss:$0 sm:$0xff] }
 0x1ad   :  { %v710_v16 = vadd.f32 %v709_v15, %v691_v13 }
 0x1ae   :  { %v798_v62 = vrot.slane %v797_v42, 4  ;;  %v728_v21 = vpop.f32.mrf.mxu2  ;;  %v788_v56 = vrot.slane %v787_v44, 1 }
 0x1af   :  { %v729_v23 = vadd.f32 %v728_v21, %v710_v16 }
 0x1b0   :  { %v799_v25 = vmax.f32 %v797_v42, %v798_v62  ;;  %v789_v0 = vmax.f32 %v787_v44, %v788_v56 }
 0x1b1   :  { %v742_v26 = vmax.f32 %v729_v23, 0.0 }
 0x1b2   :  { %v800_v24 = vrot.slane %v799_v25, 2  ;;  %v822_v3 = vmul.f32 %v816_v1, %v789_v0 }
 0x1b3   :  { %v768_v32 = vsel %vm1421_vm14, %v742_v26, 0.0 }
 0x1b4   :  { %v801_v33 = vmax.f32 %v799_v25, %v800_v24  ;;  %v804_v34 = vmax.f32 %v765_v4, %v768_v32 }
 0x1b6   :  { %v802_v40 = vrot.slane %v801_v33, 1  ;;  %v805_v41 = vrot.slane %v804_v34, 4 }
 0x1b8   :  { %v803_v45 = vmax.f32 %v801_v33, %v802_v40  ;;  %v806_v47 = vmax.f32 %v804_v34, %v805_v41 }
 0x1ba   :  { %v807_v51 = vrot.slane %v806_v47, 2  ;;  %v824_v53 = vmul.f32 %v815_v48, %v803_v45 }
 0x1bc   :  { %v808_v57 = vmax.f32 %v806_v47, %v807_v51  ;;  %v835_v37 = vrot.slane %v824_v53, 7 }
 0x1be   :  { %v809_v46 = vrot.slane %v808_v57, 1  ;;  %v836_v39 = vsel %vm833_vm0, %v835_v37, %v821_v55 }
 0x1bf   :  { %v844_v2 = vsel %vm842_vm1, %v836_v39, 0.0 }
 0x1c0   :  { %v810_v60 = vmax.f32 %v808_v57, %v809_v46  ;;  %v845_v49 = vadd.f32 %v844_v2, %v843_v5 }
 0x1c2   :  { %v825_v31 = vmul.f32 %v816_v1, %v810_v60 }
 0x1c4   :  { %v837_v58 = vrot.slane %v825_v31, 7 }
 0x1c6   :  { %v838_v6 = vsel %vm833_vm0, %v837_v58, %v822_v3 }
 0x1c7   :  { %v846_v7 = vsel %vm842_vm1, %v838_v6, 0.0 }
 0x1c8   :  { %v847_v8 = vadd.f32 %v846_v7, %v845_v49 }
 0x1ca   :  { %848 = vadd.xlane.f32.xlu2 %v847_v8 }
 0x23d   :  { %v849_v11 = vpop.xlane.xlu2 %848 }
 0x23e   :  { %v852_v12 = vadd.f32 %v1205_v10, %v849_v11 }
 0x240   :  { %854 = vst.msk [vmem:[%s1457_s3] sm:$0x3] %vm853_vm2, %v852_v12 }
 0x241   :  { %859 = vsyncpa [#allocation3], 1 }

</bundles_post_ra>
